<compile_context>
chip_gen: v5e
topology: v5e:2x2
jax: 0.10.0
libtpu: 0.0.40
codegen_flags: <defaults>
</compile_context>

<pallas_src>
import jax
import jax.numpy as jnp
from jax.experimental import pallas as pl
from jax.experimental.pallas import tpu as pltpu


# ----------------------------------------------------------------------------
# Kernel: row-wise logsumexp over the class (lane) axis.
# ----------------------------------------------------------------------------
def _lse_kernel(x_ref, lse_ref):
    # x_ref  : (TN, C) logits tile (f32 or bf16)
    # lse_ref: (TN, 1) f32
    x = x_ref[...]
    # Row max in the streaming dtype (max is exact under bf16 -> f32); cast
    # once for the exp pass (f32 math is required on v5e anyway).
    m = jnp.max(x, axis=-1, keepdims=True).astype(jnp.float32)
    xf = x.astype(jnp.float32)
    s = jnp.sum(jnp.exp(xf - m), axis=-1, keepdims=True)
    lse_ref[...] = jnp.log(s) + m


# ----------------------------------------------------------------------------
# Tiling helpers (generation aware).
# ----------------------------------------------------------------------------
def _round_up(x, m):
    return ((x + m - 1) // m) * m


def _vmem_capacity_bytes():
    try:
        info = pltpu.get_tpu_info()
        cap = getattr(info, "vmem_capacity_bytes", None)
        if cap:
            return int(cap)
    except Exception:
        pass
    return 64 * 1024 * 1024  # conservative default: v7x per-TC VMEM


def _choose_tiling(n, c, itemsize, tile_n):
    """Pick a batch-tile size: big enough to hide the ~0.35us per-step
    overhead, small enough that double-buffered logits tiles (plus the small
    lane-padded output buffers) fit the scoped VMEM of every generation."""
    cap = _vmem_capacity_bytes()
    if cap >= 96 * 1024 * 1024:          # v5e / v6e: 128 MiB physical VMEM
        target_bytes = 14 << 20          # per logits buffer
        vmem_limit = 64 << 20
    else:                                # v7x: 64 MiB physical VMEM
        target_bytes = 8 << 20
        vmem_limit = 40 << 20
    max_tn = 4096
    # sublane alignment: f32 -> 8, bf16 -> 16, int8/fp8 -> 32
    align = 8 if itemsize >= 4 else (16 if itemsize == 2 else 32)
    if tile_n is None:
        rows = max(align, target_bytes // max(1, c * itemsize))
        rows = min(rows, max_tn)
    else:
        rows = max(align, tile_n)
    rows = _round_up(rows, align)
    n_aligned = _round_up(n, align)
    return min(rows, n_aligned), vmem_limit


def _logsumexp_rows_pallas(logits, tile_n=None):
    """Per-row logsumexp of an (N, C) array via an auto-pipelined Pallas
    kernel.  Returns an (N,) f32 vector."""
    n, c = logits.shape
    tn, vmem_limit = _choose_tiling(n, c, logits.dtype.itemsize, tile_n)
    grid_n = pl.cdiv(n, tn)
    n_pad = grid_n * tn
    pad = n_pad - n
    if pad:
        # Zero rows have a finite lse (= log C) and are sliced off below.
        logits = jnp.pad(logits, ((0, pad), (0, 0)))

    lse = pl.pallas_call(
        _lse_kernel,
        out_shape=jax.ShapeDtypeStruct((n_pad, 1), jnp.float32),
        grid=(grid_n,),
        in_specs=[pl.BlockSpec((tn, c), lambda i: (i, 0))],
        out_specs=pl.BlockSpec((tn, 1), lambda i: (i, 0)),
        compiler_params=pltpu.CompilerParams(
            # No cross-step accumulator -> the axis is truly parallel, which
            # lets v7x shard grid steps across its two TensorCores.
            dimension_semantics=("parallel",),
            vmem_limit_bytes=vmem_limit,
        ),
    )(logits)
    return lse[:n, 0]


# ----------------------------------------------------------------------------
# Public wrapper: matches nn.CrossEntropyLoss(weight=cls_weights) forward.
# ----------------------------------------------------------------------------
def cross_entropy_loss_pallas(projections, targets, cls_weights=None, *,
                              tile_n=None, stream_bf16=False,
                              min_pallas_elems=1 << 16):
    """projections: [N, C] float, targets: [N] int, cls_weights: optional [C].

    stream_bf16: cast f32 logits to bf16 for the HBM->VMEM stream (halves
                 traffic on a memory-bound kernel); math stays f32 in-kernel.
    min_pallas_elems: below this many logits elements fall back to pure JAX
                 (a pallas_call has ~us fixed cost and tiny C under-fills the
                 128-wide lanes); pass 0 to force the kernel.
    """
    n, c = projections.shape
    targets = targets.astype(jnp.int32)

    if n * c < min_pallas_elems:
        # Small-shape fallback: XLA beats the kernel's fixed cost here.
        x_src = projections
        lse = jax.nn.logsumexp(x_src.astype(jnp.float32), axis=-1)
    else:
        x_src = projections.astype(jnp.bfloat16) if stream_bf16 else projections
        lse = _logsumexp_rows_pallas(x_src, tile_n=tile_n)

    # O(N) epilogue in XLA: target gather (reads N elements, not N*C),
    # optional class-weight gather, weighted mean.
    x_y = jnp.take_along_axis(x_src, targets[:, None], axis=-1)[:, 0]
    per = lse - x_y.astype(jnp.float32)                      # (N,)

    if cls_weights is None:
        return jnp.mean(per)
    w_y = cls_weights.astype(jnp.float32)[targets]           # (N,)
    return jnp.sum(w_y * per) / jnp.sum(w_y)


# ----------------------------------------------------------------------------
# Demo / self-test.
# ----------------------------------------------------------------------------
if __name__ == "__main__":
    key = jax.random.PRNGKey(0)
    k1, k2, k3 = jax.random.split(key, 3)

    # Small shapes: batch of 36 samples, 32 classes.  tile_n=16 forces a
    # multi-step grid (grid=3) plus row padding; min_pallas_elems=0 forces the
    # Pallas path at these tiny demo shapes.
    N, C = 36, 32
    projections = jax.random.normal(k1, (N, C), dtype=jnp.float32)
    targets = jax.random.randint(k2, (N,), 0, C, dtype=jnp.int32)
    cls_weights = 0.5 + jax.random.uniform(k3, (C,), dtype=jnp.float32)

    # weighted (args.reweight = True), multi-tile + padded rows
    loss_w = cross_entropy_loss_pallas(projections, targets, cls_weights,
                                       tile_n=16, min_pallas_elems=0)
    # unweighted (args.reweight = False), auto tile size
    loss_u = cross_entropy_loss_pallas(projections, targets, None,
                                       min_pallas_elems=0)
    # bf16 logits streamed from HBM (halved traffic), f32 math in kernel
    loss_b = cross_entropy_loss_pallas(projections, targets, cls_weights,
                                       tile_n=16, min_pallas_elems=0,
                                       stream_bf16=True)
    # small-shape fallback path (pure JAX dispatch)
    loss_f = cross_entropy_loss_pallas(projections, targets, cls_weights)

    jax.block_until_ready((loss_w, loss_u, loss_b, loss_f))

    # pure-JAX reference (matches torch.nn.CrossEntropyLoss, reduction='mean')
    def ref_ce(x, y, w):
        x = x.astype(jnp.float32)
        lse = jax.nn.logsumexp(x, axis=-1)
        x_y = jnp.take_along_axis(x, y[:, None], axis=-1)[:, 0]
        per = lse - x_y
        wy = w[y]
        return jnp.sum(wy * per) / jnp.sum(wy)

    ones = jnp.ones((C,), jnp.float32)
    ref_w = ref_ce(projections, targets, cls_weights)
    ref_u = ref_ce(projections, targets, ones)
    ref_b = ref_ce(projections.astype(jnp.bfloat16), targets, cls_weights)

    assert jnp.allclose(loss_w, ref_w, atol=1e-5), (loss_w, ref_w)
    assert jnp.allclose(loss_u, ref_u, atol=1e-5), (loss_u, ref_u)
    assert jnp.allclose(loss_f, ref_w, atol=1e-5), (loss_f, ref_w)
    assert jnp.allclose(loss_b, ref_b, atol=1e-4), (loss_b, ref_b)

    print("KERNEL_OK")
</pallas_src>

<mosaic_0001>
module attributes {stable_mosaic.version = 11 : i64} {
  func.func @_lse_kernel(%arg0: i32, %arg1: memref<16x32xf32, #tpu.memory_space<vmem>>, %arg2: memref<16x1xf32, #tpu.memory_space<vmem>>) attributes {dimension_semantics = [#tpu.dimension_semantics<parallel>], iteration_bounds = array<i64: 3>, scalar_prefetch = 0 : i64, scratch_operands = 0 : i64, tpu.core_type = #tpu.core_type<tc>, window_params = [{transform_indices = @transform_0, window_bounds = array<i64: 16, 32>}, {transform_indices = @transform_1, window_bounds = array<i64: 16, 1>}]} {
    %c0 = arith.constant 0 : index
    %c0_0 = arith.constant 0 : index
    %0 = vector.load %arg1[%c0, %c0_0] : memref<16x32xf32, #tpu.memory_space<vmem>>, vector<16x32xf32>
    %cst = arith.constant dense<0xFF800000> : vector<16xf32>
    %1 = vector.multi_reduction <maximumf>, %0, %cst [1] : vector<16x32xf32> to vector<16xf32>
    %2 = vector.shape_cast %1 : vector<16xf32> to vector<16x1xf32>
    %3 = vector.broadcast %2 : vector<16x1xf32> to vector<16x32xf32>
    %4 = arith.subf %0, %3 : vector<16x32xf32>
    %5 = math.exp %4 : vector<16x32xf32>
    %cst_1 = arith.constant dense<0.000000e+00> : vector<16xf32>
    %6 = vector.multi_reduction <add>, %5, %cst_1 [1] : vector<16x32xf32> to vector<16xf32>
    %7 = vector.shape_cast %6 : vector<16xf32> to vector<16x1xf32>
    %8 = math.log %7 : vector<16x1xf32>
    %9 = arith.addf %8, %2 : vector<16x1xf32>
    %c0_2 = arith.constant 0 : index
    %c0_3 = arith.constant 0 : index
    %10 = vector.load %arg2[%c0_2, %c0_3] : memref<16x1xf32, #tpu.memory_space<vmem>>, vector<16x1xf32>
    tpu.vector_store %arg2[%c0_2, %c0_3], %9 {strides = array<i32>} : memref<16x1xf32, #tpu.memory_space<vmem>>, vector<16x1xf32>,
    return
  }
  func.func @transform_0(%arg0: i32) -> (i32, i32) {
    %c0_i32 = arith.constant 0 : i32
    %c0_i32_0 = arith.constant 0 : i32
    return %arg0, %c0_i32 : i32, i32
  }
  func.func @transform_1(%arg0: i32) -> (i32, i32) {
    %c0_i32 = arith.constant 0 : i32
    %c0_i32_0 = arith.constant 0 : i32
    return %arg0, %c0_i32 : i32, i32
  }
}

</mosaic_0001>

<bundles_post_ra>
// kernel: tpu_custom_call.1
= control target key start
LH: loop header
LB: loop body
LE: loop exit
PB: predicated region body
PF: predicated region fallthrough
CT: control target
= control target key end

     0   :  { %s251_s6 = smov 0   ;;  %s275_s0 = inlined_call_operand.vmem [shape: f32[48,32], index: 0, kind: input, shape index: {}]   ;;  %s276_s1 = inlined_call_operand.vmem [shape: f32[48,1], index: 1, kind: output, shape index: {}]  }
   0x1 LB: > { %s206_s7 = sadd.s32 4294967295, %s239_s6   ;;  %p210_p0 = scmp.ge.s32.totalorder %s239_s6, 1  ;;  %s239_s6 = sphi %s251_s6, %s11_s6  }
   0x2   : > { %p88_p1 = scmp.lt.s32.totalorder %s239_s6, 4 }
   0x4   : > { %p89_p2 = pnand %p210_p0, %p88_p1 }
   0x5   : > { %s211_s8 = sshll.u32 (!%p89_p2), %s206_s7, 1 }
   0x6   : > { %92 = sbr.rel (%p89_p2) target bundleno = 280 (0x118), region = 24  ;;  %p109_p3 = scmp.lt.s32.totalorder (!%p89_p2), %s211_s8, 5 }
   0xb   : > { %s278_s8 = smov (!%p109_p3, %s211_s8), 5  ;;  %vm122_vm0 = vcmask 261120   ;;  %vm147_vm1 = vcmask 7168  }
   0xc   : > { %s212_s9 = sshll.u32 %s278_s8, 3 }
   0xd   : > { %s112_s12 = scalar_lea.vmem %s275_s0, %s212_s9  ;;  %s118_s15 = scalar_lea.vmem %s276_s1, %s212_s9 }
   0xe   : > { %v120_v0 = vld [vmem:[%s112_s12] sm:$0xff]  ;;  %v121_v2 = vld [vmem:[%s112_s12 + $0x8] sm:$0xff] }
   0xf   : > { %v123_v1 = vsel %vm122_vm0, %v120_v0, -inf  ;;  %v126_v3 = vsel %vm122_vm0, %v121_v2, -inf }
  0x10   : > { %124 = vmax.xlane.f32.xlu0 %v123_v1 }
  0x18   : > { %127 = vmax.xlane.f32.xlu0 %v126_v3 }
  0x83   : > { %v125_v4 = vpop.xlane.xlu0 %124 }
  0x84   : > { %v129_v5 = vsub.f32 %v120_v0, %v125_v4 }
  0x86   : > { %v131_v6 = vmul.f32 1.442695, %v129_v5 }
  0x88   : > { %225 = vpow2.f32 %v131_v6 }
  0x8b   : > { %v128_v7 = vpop.xlane.xlu0 %127 }
  0x8c   : > { %v130_v8 = vsub.f32 %v121_v2, %v128_v7 }
  0x8e   : > { %v226_v9 = vpop.eup %225  ;;  %v133_v10 = vmul.f32 1.442695, %v130_v8 }
  0x8f   : > { %v135_v11 = vsel %vm122_vm0, %v226_v9, 0.0 }
  0x90   : > { %227 = vpow2.f32 %v133_v10  ;;  %136 = vadd.xlane.f32.xlu1 %v135_v11 }
  0x96   : > { %v228_v12 = vpop.eup %227 }
  0x97   : > { %v138_v13 = vsel %vm122_vm0, %v228_v12, 0.0 }
  0x98   : > { %139 = vadd.xlane.f32.xlu1 %v138_v13 }
 0x103   : > { %v137_v14 = vpop.xlane.xlu1 %136 }
 0x104   : > { %229 = vlog2.f32 %v137_v14 }
 0x10a   : > { %v230_v15 = vpop.eup %229 }
 0x10b   : > { %v142_v16 = vmul.f32 0.6931472, %v230_v15  ;;  %v140_v17 = vpop.xlane.xlu1 %139 }
 0x10c   : > { %231 = vlog2.f32 %v140_v17 }
 0x10d   : > { %v145_v18 = vadd.f32 %v142_v16, %v125_v4 }
 0x10f   : > { %148 = vst.msk [vmem:[%s118_s15] sm:$0xff] %vm147_vm1, %v145_v18 }
 0x112   : > { %v232_v19 = vpop.eup %231 }
 0x113   : > { %v144_v20 = vmul.f32 0.6931472, %v232_v19 }
 0x115   : > { %v146_v21 = vadd.f32 %v144_v20, %v128_v7 }
 0x117   : > { %149 = vst.msk [vmem:[%s118_s15 + $0x8] sm:$0xff] %vm147_vm1, %v146_v21 }
 0x118 PF: > { %s11_s6 = sadd.s32 1, %s239_s6  }
 0x119   : > { %p8_p4 = scmp.ge.s32.totalorder %s11_s6, 5  }
 0x11b   :  { %10 = sbr.rel (!%p8_p4) target bundleno = 1 (0x1), region = 54 }

</bundles_post_ra>
